<compile_context>
chip_gen: v7x
topology: tpu7x:2x2x1
jax: 0.10.0
libtpu: 0.0.40
codegen_flags: <defaults>
</compile_context>

<pallas_src>
import jax
import jax.numpy as jnp
import numpy as np
from jax.experimental import pallas as pl
from jax.experimental.pallas import tpu as pltpu


def _gp_reg_kernel(ids_ref, wv_ref, table_ref, w1_ref, b1_ref, w2_ref, b2_ref, out_ref):
    # ids_ref:   (TB*SL, 1) int32   flattened token ids for this batch tile
    # wv_ref:    (TB*SL, 1) f32     per-token pooling weight (mask / (S * count))
    # table_ref: (V, D) f32         token-embedding table (resident in VMEM)
    # w1_ref:    (D, H) f32         b1_ref: (1, H) f32
    # w2_ref:    (H, OUT) f32       b2_ref: (1, OUT) f32
    # out_ref:   (TB, OUT) f32
    tbsl = ids_ref.shape[0]
    vocab = table_ref.shape[0]
    tb = out_ref.shape[0]
    sl = tbsl // tb

    ids = ids_ref[...]                                            # (TB*SL, 1) int32
    wv = wv_ref[...]                                              # (TB*SL, 1) f32

    # Weighted one-hot over the vocab: row k has weight wv[k] at column ids[k].
    vocab_iota = jax.lax.broadcasted_iota(jnp.int32, (tbsl, vocab), 1)
    onehot_w = jnp.where(vocab_iota == ids, wv, 0.0)              # (TB*SL, V)

    # Fused gather + per-token weighting on the MXU: (TB*SL, V) @ (V, D).
    emb_w = jnp.dot(onehot_w, table_ref[...],
                    preferred_element_type=jnp.float32)           # (TB*SL, D)

    # Per-example reduction over the SL tokens of each row, as a matmul against a
    # block-of-ones segment matrix built from iotas (no relayout, no division).
    row = jax.lax.broadcasted_iota(jnp.int32, (tb, tbsl), 0)
    col = jax.lax.broadcasted_iota(jnp.int32, (tb, tbsl), 1)
    seg = ((col >= row * sl) & (col < (row + 1) * sl)).astype(jnp.float32)  # (TB, TB*SL)
    pooled = jnp.dot(seg, emb_w, preferred_element_type=jnp.float32)        # (TB, D)

    # Regression head: Linear -> ReLU -> Linear, with TB rows feeding the MXU.
    h = jnp.dot(pooled, w1_ref[...], preferred_element_type=jnp.float32) + b1_ref[...]
    h = jnp.maximum(h, 0.0)                                       # (TB, H)
    y = jnp.dot(h, w2_ref[...], preferred_element_type=jnp.float32) + b2_ref[...]
    out_ref[...] = y                                              # single dense store


def gp_regression_forward(token_ids, attn_mask, emb_table, w1, b1, w2, b2):
    """token_ids: [B,S,L] int32, attn_mask: [B,S,L] f32 -> [B, OUT] f32."""
    B, S, L = token_ids.shape
    V, D = emb_table.shape
    H = w1.shape[1]
    OUT = w2.shape[1]
    SL = S * L

    # Per-token pooling weight: masked mean over tokens then mean over subtexts,
    # folded into one weight per token (reciprocal computed outside the vector path).
    counts = jnp.maximum(attn_mask.sum(axis=2, keepdims=True), 1.0)     # [B, S, 1]
    w_tok = attn_mask / (counts * S)                                    # [B, S, L]

    # Batch tiling: whole batch per grid step when it fits (TB rows on sublanes).
    B8 = -(-B // 8) * 8
    TB = min(B8, 128)
    B_pad = -(-B // TB) * TB

    ids_flat = token_ids.reshape(B, SL).astype(jnp.int32)
    w_flat = w_tok.reshape(B, SL).astype(jnp.float32)
    if B_pad != B:
        ids_flat = jnp.pad(ids_flat, ((0, B_pad - B), (0, 0)))
        w_flat = jnp.pad(w_flat, ((0, B_pad - B), (0, 0)))          # zero weights => zero rows

    ids2d = ids_flat.reshape(B_pad * SL, 1)
    wv2d = w_flat.reshape(B_pad * SL, 1)

    out = pl.pallas_call(
        _gp_reg_kernel,
        out_shape=jax.ShapeDtypeStruct((B_pad, OUT), jnp.float32),
        grid_spec=pltpu.PrefetchScalarGridSpec(
            num_scalar_prefetch=0,
            grid=(B_pad // TB,),
            in_specs=[
                pl.BlockSpec((TB * SL, 1), lambda i: (i, 0)),   # token ids (batch tile)
                pl.BlockSpec((TB * SL, 1), lambda i: (i, 0)),   # pooling weights
                pl.BlockSpec((V, D), lambda i: (0, 0)),         # embedding table (constant)
                pl.BlockSpec((D, H), lambda i: (0, 0)),
                pl.BlockSpec((1, H), lambda i: (0, 0)),
                pl.BlockSpec((H, OUT), lambda i: (0, 0)),
                pl.BlockSpec((1, OUT), lambda i: (0, 0)),
            ],
            out_specs=pl.BlockSpec((TB, OUT), lambda i: (i, 0)),
        ),
        compiler_params=pltpu.CompilerParams(
            dimension_semantics=("parallel",)),
    )(ids2d, wv2d, emb_table, w1, b1, w2, b2)
    return out[:B]


def reference_forward(token_ids, attn_mask, emb_table, w1, b1, w2, b2):
    emb = emb_table[token_ids]                                  # [B, S, L, D]
    masked = emb * attn_mask[..., None]
    sums = masked.sum(axis=2)                                   # [B, S, D]
    counts = jnp.maximum(attn_mask.sum(axis=2, keepdims=True), 1.0)
    subtext_emb = sums / counts                                 # [B, S, D]
    pooled = subtext_emb.mean(axis=1)                           # [B, D]
    h = jnp.maximum(pooled @ w1 + b1, 0.0)
    return h @ w2 + b2                                          # [B, OUT]


if __name__ == "__main__":
    # Small shapes consistent with the module's forward.
    B, S, L = 8, 4, 8              # batch, num subtexts, tokens per subtext
    V, D, H, OUT = 64, 32, 32, 1   # vocab, embedding dim, hidden dim, regression output

    key = jax.random.PRNGKey(0)
    k_tok, k_len, k_emb, k_w1, k_b1, k_w2, k_b2 = jax.random.split(key, 7)

    # "tokenized_input_subtexts" and "subtexts_attention_masks"
    token_ids = jax.random.randint(k_tok, (B, S, L), 0, V)
    lengths = jax.random.randint(k_len, (B, S), 1, L + 1)
    attn_mask = (jnp.arange(L)[None, None, :] < lengths[..., None]).astype(jnp.float32)

    # Deterministic parameters
    emb_table = jax.random.normal(k_emb, (V, D), jnp.float32) * 0.1
    w1 = jax.random.normal(k_w1, (D, H), jnp.float32) * 0.1
    b1 = jax.random.normal(k_b1, (1, H), jnp.float32) * 0.01
    w2 = jax.random.normal(k_w2, (H, OUT), jnp.float32) * 0.1
    b2 = jax.random.normal(k_b2, (1, OUT), jnp.float32) * 0.01

    out = gp_regression_forward(token_ids, attn_mask, emb_table, w1, b1, w2, b2)
    out = jax.block_until_ready(out)

    ref = reference_forward(token_ids, attn_mask, emb_table, w1, b1, w2, b2)
    np.testing.assert_allclose(np.asarray(out), np.asarray(ref), rtol=1e-5, atol=1e-5)

    print("KERNEL_OK")
</pallas_src>

<mosaic_0001>
module attributes {stable_mosaic.version = 11 : i64} {
  func.func @_gp_reg_kernel(%arg0: i32, %arg1: memref<256x1xi32, #tpu.memory_space<vmem>>, %arg2: memref<256x1xf32, #tpu.memory_space<vmem>>, %arg3: memref<64x32xf32, #tpu.memory_space<vmem>>, %arg4: memref<32x32xf32, #tpu.memory_space<vmem>>, %arg5: memref<1x32xf32, #tpu.memory_space<vmem>>, %arg6: memref<32x1xf32, #tpu.memory_space<vmem>>, %arg7: memref<1x1xf32, #tpu.memory_space<vmem>>, %arg8: memref<8x1xf32, #tpu.memory_space<vmem>>) attributes {dimension_semantics = [#tpu.dimension_semantics<parallel>], iteration_bounds = array<i64: 1>, scalar_prefetch = 0 : i64, scratch_operands = 0 : i64, tpu.core_type = #tpu.core_type<tc>, window_params = [{transform_indices = @transform_0, window_bounds = array<i64: 256, 1>}, {transform_indices = @transform_1, window_bounds = array<i64: 256, 1>}, {pipeline_mode = #tpu.pipeline_mode<synchronous>, transform_indices = @transform_2, window_bounds = array<i64: 64, 32>}, {pipeline_mode = #tpu.pipeline_mode<synchronous>, transform_indices = @transform_3, window_bounds = array<i64: 32, 32>}, {pipeline_mode = #tpu.pipeline_mode<synchronous>, transform_indices = @transform_4, window_bounds = array<i64: 1, 32>}, {pipeline_mode = #tpu.pipeline_mode<synchronous>, transform_indices = @transform_5, window_bounds = array<i64: 32, 1>}, {pipeline_mode = #tpu.pipeline_mode<synchronous>, transform_indices = @transform_6, window_bounds = array<i64: 1, 1>}, {transform_indices = @transform_7, window_bounds = array<i64: 8, 1>}]} {
    %c0 = arith.constant 0 : index
    %c0_0 = arith.constant 0 : index
    %0 = vector.load %arg1[%c0, %c0_0] : memref<256x1xi32, #tpu.memory_space<vmem>>, vector<256x1xi32>
    %c0_1 = arith.constant 0 : index
    %c0_2 = arith.constant 0 : index
    %1 = vector.load %arg2[%c0_1, %c0_2] : memref<256x1xf32, #tpu.memory_space<vmem>>, vector<256x1xf32>
    %2 = tpu.iota {dimensions = array<i32: 1>} : vector<256x64xi32>
    %3 = vector.broadcast %0 : vector<256x1xi32> to vector<256x64xi32>
    %4 = arith.cmpi eq, %2, %3 : vector<256x64xi32>
    %cst = arith.constant 0.000000e+00 : f32
    %5 = vector.shape_cast %1 : vector<256x1xf32> to vector<256x1xf32>
    %6 = vector.broadcast %5 : vector<256x1xf32> to vector<256x64xf32>
    %7 = vector.broadcast %cst : f32 to vector<256x64xf32>
    %8 = arith.select %4, %6, %7 : vector<256x64xi1>, vector<256x64xf32>
    %c0_3 = arith.constant 0 : index
    %c0_4 = arith.constant 0 : index
    %9 = vector.load %arg3[%c0_3, %c0_4] : memref<64x32xf32, #tpu.memory_space<vmem>>, vector<64x32xf32>
    %cst_5 = arith.constant dense<0.000000e+00> : vector<256x32xf32>
    %10 = tpu.matmul %8, %9, %cst_5 {dimension_numbers = #tpu.dot_dimension_numbers<[1], [0], [0], [1], [0, 0, 1, 1], [], []>} : vector<256x64xf32>, vector<64x32xf32>, vector<256x32xf32> -> vector<256x32xf32>
    %11 = tpu.iota {dimensions = array<i32: 0>} : vector<8x256xi32>
    %12 = tpu.iota {dimensions = array<i32: 1>} : vector<8x256xi32>
    %c32_i32 = arith.constant 32 : i32
    %13 = vector.broadcast %c32_i32 : i32 to vector<8x256xi32>
    %14 = arith.muli %11, %13 : vector<8x256xi32>
    %15 = arith.cmpi sge, %12, %14 : vector<8x256xi32>
    %c1_i32 = arith.constant 1 : i32
    %16 = vector.broadcast %c1_i32 : i32 to vector<8x256xi32>
    %17 = arith.addi %11, %16 : vector<8x256xi32>
    %c32_i32_6 = arith.constant 32 : i32
    %18 = vector.broadcast %c32_i32_6 : i32 to vector<8x256xi32>
    %19 = arith.muli %17, %18 : vector<8x256xi32>
    %20 = arith.cmpi slt, %12, %19 : vector<8x256xi32>
    %21 = arith.andi %15, %20 : vector<8x256xi1>
    %22 = arith.extui %21 : vector<8x256xi1> to vector<8x256xi32>
    %23 = arith.sitofp %22 : vector<8x256xi32> to vector<8x256xf32>
    %cst_7 = arith.constant dense<0.000000e+00> : vector<8x32xf32>
    %24 = tpu.matmul %23, %10, %cst_7 {dimension_numbers = #tpu.dot_dimension_numbers<[1], [0], [0], [1], [0, 0, 1, 1], [], []>} : vector<8x256xf32>, vector<256x32xf32>, vector<8x32xf32> -> vector<8x32xf32>
    %c0_8 = arith.constant 0 : index
    %c0_9 = arith.constant 0 : index
    %25 = vector.load %arg4[%c0_8, %c0_9] : memref<32x32xf32, #tpu.memory_space<vmem>>, vector<32x32xf32>
    %cst_10 = arith.constant dense<0.000000e+00> : vector<8x32xf32>
    %26 = tpu.matmul %24, %25, %cst_10 {dimension_numbers = #tpu.dot_dimension_numbers<[1], [0], [0], [1], [0, 0, 1, 1], [], []>} : vector<8x32xf32>, vector<32x32xf32>, vector<8x32xf32> -> vector<8x32xf32>
    %c0_11 = arith.constant 0 : index
    %c0_12 = arith.constant 0 : index
    %27 = vector.load %arg5[%c0_11, %c0_12] : memref<1x32xf32, #tpu.memory_space<vmem>>, vector<1x32xf32>
    %28 = vector.broadcast %27 : vector<1x32xf32> to vector<8x32xf32>
    %29 = arith.addf %26, %28 : vector<8x32xf32>
    %cst_13 = arith.constant 0.000000e+00 : f32
    %30 = vector.broadcast %cst_13 : f32 to vector<8x32xf32>
    %31 = arith.maximumf %29, %30 : vector<8x32xf32>
    %c0_14 = arith.constant 0 : index
    %c0_15 = arith.constant 0 : index
    %32 = vector.load %arg6[%c0_14, %c0_15] : memref<32x1xf32, #tpu.memory_space<vmem>>, vector<32x1xf32>
    %cst_16 = arith.constant dense<0.000000e+00> : vector<8x1xf32>
    %33 = tpu.matmul %31, %32, %cst_16 {dimension_numbers = #tpu.dot_dimension_numbers<[1], [0], [0], [1], [0, 0, 1, 1], [], []>} : vector<8x32xf32>, vector<32x1xf32>, vector<8x1xf32> -> vector<8x1xf32>
    %c0_17 = arith.constant 0 : index
    %c0_18 = arith.constant 0 : index
    %34 = vector.load %arg7[%c0_17, %c0_18] : memref<1x1xf32, #tpu.memory_space<vmem>>, vector<1x1xf32>
    %35 = vector.broadcast %34 : vector<1x1xf32> to vector<8x1xf32>
    %36 = arith.addf %33, %35 : vector<8x1xf32>
    %c0_19 = arith.constant 0 : index
    %c0_20 = arith.constant 0 : index
    %37 = vector.load %arg8[%c0_19, %c0_20] : memref<8x1xf32, #tpu.memory_space<vmem>>, vector<8x1xf32>
    tpu.vector_store %arg8[%c0_19, %c0_20], %36 {strides = array<i32>} : memref<8x1xf32, #tpu.memory_space<vmem>>, vector<8x1xf32>,
    return
  }
  func.func @transform_0(%arg0: i32) -> (i32, i32) {
    %c0_i32 = arith.constant 0 : i32
    %c0_i32_0 = arith.constant 0 : i32
    return %arg0, %c0_i32 : i32, i32
  }
  func.func @transform_1(%arg0: i32) -> (i32, i32) {
    %c0_i32 = arith.constant 0 : i32
    %c0_i32_0 = arith.constant 0 : i32
    return %arg0, %c0_i32 : i32, i32
  }
  func.func @transform_2(%arg0: i32) -> (i32, i32) {
    %c0_i32 = arith.constant 0 : i32
    %c0_i32_0 = arith.constant 0 : i32
    %c0_i32_1 = arith.constant 0 : i32
    return %c0_i32, %c0_i32_0 : i32, i32
  }
  func.func @transform_3(%arg0: i32) -> (i32, i32) {
    %c0_i32 = arith.constant 0 : i32
    %c0_i32_0 = arith.constant 0 : i32
    %c0_i32_1 = arith.constant 0 : i32
    return %c0_i32, %c0_i32_0 : i32, i32
  }
  func.func @transform_4(%arg0: i32) -> (i32, i32) {
    %c0_i32 = arith.constant 0 : i32
    %c0_i32_0 = arith.constant 0 : i32
    %c0_i32_1 = arith.constant 0 : i32
    return %c0_i32, %c0_i32_0 : i32, i32
  }
  func.func @transform_5(%arg0: i32) -> (i32, i32) {
    %c0_i32 = arith.constant 0 : i32
    %c0_i32_0 = arith.constant 0 : i32
    %c0_i32_1 = arith.constant 0 : i32
    return %c0_i32, %c0_i32_0 : i32, i32
  }
  func.func @transform_6(%arg0: i32) -> (i32, i32) {
    %c0_i32 = arith.constant 0 : i32
    %c0_i32_0 = arith.constant 0 : i32
    %c0_i32_1 = arith.constant 0 : i32
    return %c0_i32, %c0_i32_0 : i32, i32
  }
  func.func @transform_7(%arg0: i32) -> (i32, i32) {
    %c0_i32 = arith.constant 0 : i32
    %c0_i32_0 = arith.constant 0 : i32
    return %arg0, %c0_i32 : i32, i32
  }
}

</mosaic_0001>

<bundles_post_ra>
// kernel: tpu_custom_call.1
= control target key start
LH: loop header
LB: loop body
LE: loop exit
PB: predicated region body
PF: predicated region fallthrough
CT: control target
= control target key end

     0   :  { %v1284_v0 = vmov 0   ;;  %vm422_vm0 = vcmask 523264   ;;  %s1670_s1 = inlined_call_operand.vmem [shape: f32[256,1], index: 1, kind: input, shape index: {}]   ;;  %s1671_s0 = inlined_call_operand.vmem [shape: s32[256,1], index: 0, kind: input, shape index: {}]   ;;  %s1672_s2 = inlined_call_operand.vmem [shape: f32[64,32], index: 2, kind: input, shape index: {}]   ;;  %s1673_s3 = inlined_call_operand.vmem [shape: f32[32,32], index: 3, kind: input, shape index: {}]   ;;  %s1674_s5 = inlined_call_operand.vmem [shape: f32[32,1], index: 5, kind: input, shape index: {}]   ;;  %s1675_s6 = inlined_call_operand.<no memory space> [shape: f32[1,1], index: 6, kind: input, shape index: {}]   ;;  %s1676_s4 = inlined_call_operand.vmem [shape: f32[1,32], index: 4, kind: input, shape index: {}]   ;;  %s1677_s7 = inlined_call_operand.vmem [shape: f32[8,1], index: 7, kind: output, shape index: {}]  }
   0x1   :  { %1283 = vset.pattern.permute.xlu1 %v1284_v0  ;;  %1282 = vset.pattern.permute.xlu0 %v1284_v0  ;;  %v60_v1 = vld [vmem:[%s1670_s1] sm:$0xff]  ;;  %v61_v3 = vld [vmem:[%s1670_s1 + $0x8] sm:$0xff]  ;;  %v31_v5 = vld [vmem:[%s1671_s0 + $0x18] sm:$0xff] }
   0x2   :  { %v28_v2 = vld [vmem:[%s1671_s0] sm:$0xff]  ;;  %224 = vperm.xlu1 %1283, %v60_v1   ;;  %v29_v4 = vld [vmem:[%s1671_s0 + $0x8] sm:$0xff]  ;;  %v30_v6 = vld [vmem:[%s1671_s0 + $0x10] sm:$0xff] }
   0x3   :  { %95 = vperm.xlu0 %1282, %v28_v2   ;;  %v63_v7 = vld [vmem:[%s1670_s1 + $0x18] sm:$0xff]  ;;  %v62_v8 = vld [vmem:[%s1670_s1 + $0x10] sm:$0xff]  ;;  %v33_v9 = vld [vmem:[%s1671_s0 + $0x28] sm:$0xff] }
   0x4   :  { %v32_v10 = vld [vmem:[%s1671_s0 + $0x20] sm:$0xff]  ;;  %v65_v11 = vld [vmem:[%s1670_s1 + $0x28] sm:$0xff]  ;;  %v416_v16 = vld [vmem:[%s1672_s2 + $0x10] sm:$0xff] }
   0x5   :  { %v64_v12 = vld [vmem:[%s1670_s1 + $0x20] sm:$0xff]  ;;  %v415_v14 = vld [vmem:[%s1672_s2 + $0x8] sm:$0xff]  ;;  %v417_v17 = vld [vmem:[%s1672_s2 + $0x18] sm:$0xff] }
   0x6   :  { %229 = vperm.xlu1 %1283, %v61_v3   ;;  %v414_v13 = vld [vmem:[%s1672_s2] sm:$0xff]  ;;  %v35_v18 = vld [vmem:[%s1671_s0 + $0x38] sm:$0xff]  ;;  %v34_v19 = vld [vmem:[%s1671_s0 + $0x30] sm:$0xff]  ;;  %v1221_v20 = vpack.c.bf16 %v417_v17, %v416_v16 }
   0x7   :  { %98 = vperm.xlu0 %1282, %v29_v4   ;;  %v1217_v15 = vpack.c.bf16 %v415_v14, %v414_v13  ;;  %v418_v21 = vld [vmem:[%s1672_s2 + $0x20] sm:$0xff]  ;;  %v419_v22 = vld [vmem:[%s1672_s2 + $0x28] sm:$0xff]  ;;  %v67_v23 = vld [vmem:[%s1670_s1 + $0x38] sm:$0xff] }
   0x8   :  { %v66_v24 = vld [vmem:[%s1670_s1 + $0x30] sm:$0xff]  ;;  %v1225_v25 = vpack.c.bf16 %v419_v22, %v418_v21  ;;  %v421_v27 = vld [vmem:[%s1672_s2 + $0x38] sm:$0xff]  ;;  %v37_v28 = vld [vmem:[%s1671_s0 + $0x48] sm:$0xff] }
   0x9   :  { %1218 = vmatprep.subr.bf16.mxu0 %v1217_v15  ;;  %v420_v26 = vld [vmem:[%s1672_s2 + $0x30] sm:$0xff]  ;;  %v36_v29 = vld [vmem:[%s1671_s0 + $0x40] sm:$0xff]  ;;  %v69_v31 = vld [vmem:[%s1670_s1 + $0x48] sm:$0xff] }
   0xa   :  { %104 = vperm.xlu1 %1283, %v31_v5   ;;  %1220 = vmatpush3.bf16.msra.mxu0 %v1217_v15  ;;  %v1229_v30 = vpack.c.bf16 %v421_v27, %v420_v26  ;;  %v68_v32 = vld [vmem:[%s1670_s1 + $0x40] sm:$0xff]  ;;  %v39_v33 = vld [vmem:[%s1671_s0 + $0x58] sm:$0xff]  ;;  %v38_v34 = vld [vmem:[%s1671_s0 + $0x50] sm:$0xff] }
   0xb   :  { %101 = vperm.xlu0 %1282, %v30_v6   ;;  %1222 = vmatprep.subr.bf16.mxu0 %v1221_v20  ;;  %v71_v35 = vld [vmem:[%s1670_s1 + $0x58] sm:$0xff]  ;;  %v70_v36 = vld [vmem:[%s1670_s1 + $0x50] sm:$0xff]  ;;  %v41_v37 = vld [vmem:[%s1671_s0 + $0x68] sm:$0xff] }
   0xc   :  { %v40_v38 = vld [vmem:[%s1671_s0 + $0x60] sm:$0xff]  ;;  %v73_v39 = vld [vmem:[%s1670_s1 + $0x68] sm:$0xff]  ;;  %v43_v41 = vld [vmem:[%s1671_s0 + $0x78] sm:$0xff] }
   0xd   :  { %v72_v40 = vld [vmem:[%s1670_s1 + $0x60] sm:$0xff]  ;;  %v42_v42 = vld [vmem:[%s1671_s0 + $0x70] sm:$0xff]  ;;  %v75_v43 = vld [vmem:[%s1670_s1 + $0x78] sm:$0xff] }
   0xe   :  { %239 = vperm.xlu1 %1283, %v63_v7   ;;  %1224 = vmatpush3.bf16.msra.mxu0 %v1221_v20  ;;  %v74_v44 = vld [vmem:[%s1670_s1 + $0x70] sm:$0xff]  ;;  %v45_v45 = vld [vmem:[%s1671_s0 + $0x88] sm:$0xff]  ;;  %v44_v46 = vld [vmem:[%s1671_s0 + $0x80] sm:$0xff] }
   0xf   :  { %234 = vperm.xlu0 %1282, %v62_v8   ;;  %1226 = vmatprep.subr.bf16.mxu0 %v1225_v25  ;;  %v77_v47 = vld [vmem:[%s1670_s1 + $0x88] sm:$0xff]  ;;  %v76_v48 = vld [vmem:[%s1670_s1 + $0x80] sm:$0xff]  ;;  %v47_v49 = vld [vmem:[%s1671_s0 + $0x98] sm:$0xff] }
  0x10   :  { %v46_v50 = vld [vmem:[%s1671_s0 + $0x90] sm:$0xff]  ;;  %v79_v51 = vld [vmem:[%s1670_s1 + $0x98] sm:$0xff]  ;;  %v49_v53 = vld [vmem:[%s1671_s0 + $0xa8] sm:$0xff] }
  0x11   :  { %v78_v52 = vld [vmem:[%s1670_s1 + $0x90] sm:$0xff]  ;;  %v48_v54 = vld [vmem:[%s1671_s0 + $0xa0] sm:$0xff]  ;;  %v81_v55 = vld [vmem:[%s1670_s1 + $0xa8] sm:$0xff] }
  0x12   :  { %110 = vperm.xlu1 %1283, %v33_v9   ;;  %1228 = vmatpush3.bf16.msra.mxu0 %v1225_v25  ;;  %v80_v56 = vld [vmem:[%s1670_s1 + $0xa0] sm:$0xff]  ;;  %v51_v57 = vld [vmem:[%s1671_s0 + $0xb8] sm:$0xff]  ;;  %v50_v58 = vld [vmem:[%s1671_s0 + $0xb0] sm:$0xff] }
  0x13   :  { %107 = vperm.xlu0 %1282, %v32_v10   ;;  %1230 = vmatprep.subr.bf16.mxu0 %v1229_v30  ;;  %v83_v59 = vld [vmem:[%s1670_s1 + $0xb8] sm:$0xff]  ;;  %v82_v60 = vld [vmem:[%s1670_s1 + $0xb0] sm:$0xff]  ;;  %v53_v61 = vld [vmem:[%s1671_s0 + $0xc8] sm:$0xff] }
  0x14   :  { %v52_v62 = vld [vmem:[%s1671_s0 + $0xc0] sm:$0xff]  ;;  %v85_v63 = vld [vmem:[%s1670_s1 + $0xc8] sm:$0xff]  ;;  %v55_v1 = vld [vmem:[%s1671_s0 + $0xd8] sm:$0xff] }
  0x15   :  { %v84_v0 = vld [vmem:[%s1670_s1 + $0xc0] sm:$0xff]  ;;  %v54_v2 = vld [vmem:[%s1671_s0 + $0xd0] sm:$0xff]  ;;  %v87_v3 = vld [vmem:[%s1670_s1 + $0xd8] sm:$0xff] }
  0x16   :  { %249 = vperm.xlu1 %1283, %v65_v11   ;;  %1232 = vmatpush3.bf16.msra.mxu0 %v1229_v30  ;;  %v86_v4 = vld [vmem:[%s1670_s1 + $0xd0] sm:$0xff]  ;;  %v57_v5 = vld [vmem:[%s1671_s0 + $0xe8] sm:$0xff]  ;;  %v56_v6 = vld [vmem:[%s1671_s0 + $0xe0] sm:$0xff]  ;;  %v92_v11 = vlaneseq }
  0x17   :  { %244 = vperm.xlu0 %1282, %v64_v12   ;;  %v89_v7 = vld [vmem:[%s1670_s1 + $0xe8] sm:$0xff]  ;;  %v88_v8 = vld [vmem:[%s1670_s1 + $0xe0] sm:$0xff]  ;;  %v59_v9 = vld [vmem:[%s1671_s0 + $0xf8] sm:$0xff] }
  0x18   :  { %v58_v10 = vld [vmem:[%s1671_s0 + $0xf0] sm:$0xff]  ;;  %v91_v12 = vld [vmem:[%s1670_s1 + $0xf8] sm:$0xff]  ;;  %v1546_v14 = vand.u32 127, %v92_v11 }
  0x19   :  { %v90_v13 = vld [vmem:[%s1670_s1 + $0xf0] sm:$0xff] }
  0x1a   :  { %116 = vperm.xlu1 %1283, %v35_v18  }
  0x1b   :  { %113 = vperm.xlu0 %1282, %v34_v19  }
  0x1e   :  { %259 = vperm.xlu1 %1283, %v67_v23  }
  0x1f   :  { %254 = vperm.xlu0 %1282, %v66_v24  }
  0x22   :  { %122 = vperm.xlu1 %1283, %v37_v28  }
  0x23   :  { %119 = vperm.xlu0 %1282, %v36_v29  }
  0x26   :  { %269 = vperm.xlu1 %1283, %v69_v31  }
  0x27   :  { %264 = vperm.xlu0 %1282, %v68_v32  }
  0x2a   :  { %128 = vperm.xlu1 %1283, %v39_v33  }
  0x2b   :  { %125 = vperm.xlu0 %1282, %v38_v34  }
  0x2e   :  { %279 = vperm.xlu1 %1283, %v71_v35  }
  0x2f   :  { %274 = vperm.xlu0 %1282, %v70_v36  }
  0x32   :  { %134 = vperm.xlu1 %1283, %v41_v37  }
  0x33   :  { %131 = vperm.xlu0 %1282, %v40_v38  }
  0x36   :  { %289 = vperm.xlu1 %1283, %v73_v39  }
  0x37   :  { %284 = vperm.xlu0 %1282, %v72_v40  }
  0x3a   :  { %140 = vperm.xlu1 %1283, %v43_v41  }
  0x3b   :  { %137 = vperm.xlu0 %1282, %v42_v42  }
  0x3e   :  { %299 = vperm.xlu1 %1283, %v75_v43  }
  0x3f   :  { %294 = vperm.xlu0 %1282, %v74_v44  }
  0x42   :  { %146 = vperm.xlu1 %1283, %v45_v45  }
  0x43   :  { %143 = vperm.xlu0 %1282, %v44_v46  }
  0x46   :  { %309 = vperm.xlu1 %1283, %v77_v47  }
  0x47   :  { %304 = vperm.xlu0 %1282, %v76_v48  }
  0x4a   :  { %152 = vperm.xlu1 %1283, %v47_v49  }
  0x4b   :  { %149 = vperm.xlu0 %1282, %v46_v50  }
  0x4e   :  { %319 = vperm.xlu1 %1283, %v79_v51  }
  0x4f   :  { %314 = vperm.xlu0 %1282, %v78_v52  }
  0x52   :  { %158 = vperm.xlu1 %1283, %v49_v53  }
  0x53   :  { %155 = vperm.xlu0 %1282, %v48_v54  }
  0x56   :  { %329 = vperm.xlu1 %1283, %v81_v55  }
  0x57   :  { %324 = vperm.xlu0 %1282, %v80_v56  }
  0x5a   :  { %164 = vperm.xlu1 %1283, %v51_v57  }
  0x5b   :  { %161 = vperm.xlu0 %1282, %v50_v58  }
  0x5e   :  { %339 = vperm.xlu1 %1283, %v83_v59  }
  0x5f   :  { %334 = vperm.xlu0 %1282, %v82_v60  }
  0x62   :  { %170 = vperm.xlu1 %1283, %v53_v61  }
  0x63   :  { %167 = vperm.xlu0 %1282, %v52_v62  }
  0x66   :  { %349 = vperm.xlu1 %1283, %v85_v63  }
  0x67   :  { %344 = vperm.xlu0 %1282, %v84_v0  }
  0x6a   :  { %176 = vperm.xlu1 %1283, %v55_v1  }
  0x6b   :  { %173 = vperm.xlu0 %1282, %v54_v2  }
  0x6e   :  { %359 = vperm.xlu1 %1283, %v87_v3  }
  0x6f   :  { %354 = vperm.xlu0 %1282, %v86_v4  }
  0x72   :  { %182 = vperm.xlu1 %1283, %v57_v5  }
  0x73   :  { %179 = vperm.xlu0 %1282, %v56_v6  }
  0x76   :  { %369 = vperm.xlu1 %1283, %v89_v7  }
  0x77   :  { %364 = vperm.xlu0 %1282, %v88_v8  }
  0x7a   :  { %188 = vperm.xlu1 %1283, %v59_v9  }
  0x7b   :  { %185 = vperm.xlu0 %1282, %v58_v10  }
  0x7e   :  { %379 = vperm.xlu1 %1283, %v91_v12  }
  0x7f   :  { %374 = vperm.xlu0 %1282, %v90_v13  }
  0x81   :  { %v225_v15 = vpop.permute.xlu1 %224 }
  0x82   :  { %v96_v16 = vpop.permute.xlu0 %95 }
  0x83   :  { %vm190_vm1 = vcmp.eq.s32.totalorder %v1546_v14, %v96_v16 }
  0x84   :  { %v382_v17 = vsel %vm190_vm1, %v225_v15, 0.0 }
  0x85   :  { %1147 = vmatprep.mubr.msk.f32.mxu0 %vm422_vm0, %v382_v17  ;;  %v230_v18 = vpop.permute.xlu1 %229 }
  0x86   :  { %v99_v19 = vpop.permute.xlu0 %98 }
  0x87   :  { %vm191_vm2 = vcmp.eq.s32.totalorder %v1546_v14, %v99_v19 }
  0x88   :  { %v383_v20 = vsel %vm191_vm2, %v230_v18, 0.0 }
  0x89   :  { %1148 = vmatmul.mubr.msk.f32.vlgmr.msra.gmra.mrb[0].mxu0 %vm422_vm0, %v383_v20  ;;  %v105_v21 = vpop.permute.xlu1 %104 }
  0x8a   :  { %v102_v22 = vpop.permute.xlu0 %101  ;;  %vm193_vm3 = vcmp.eq.s32.totalorder %v1546_v14, %v105_v21 }
  0x8b   :  { %vm192_vm4 = vcmp.eq.s32.totalorder %v1546_v14, %v102_v22 }
  0x8d   :  { %v240_v23 = vpop.permute.xlu1 %239 }
  0x8e   :  { %v235_v24 = vpop.permute.xlu0 %234  ;;  %v385_v25 = vsel %vm193_vm3, %v240_v23, 0.0 }
  0x8f   :  { %v384_v26 = vsel %vm192_vm4, %v235_v24, 0.0 }
  0x90   :  { %1150 = vmatprep.mubr.msk.f32.mxu0 %vm422_vm0, %v384_v26 }
  0x91   :  { %1151 = vmatmul.mubr.msk.f32.gmra.mrb[2].mxu0 %vm422_vm0, %v385_v25  ;;  %v111_v27 = vpop.permute.xlu1 %110 }
  0x92   :  { %v108_v28 = vpop.permute.xlu0 %107  ;;  %vm195_vm5 = vcmp.eq.s32.totalorder %v1546_v14, %v111_v27 }
  0x93   :  { %vm194_vm6 = vcmp.eq.s32.totalorder %v1546_v14, %v108_v28 }
  0x95   :  { %v250_v29 = vpop.permute.xlu1 %249 }
  0x96   :  { %v245_v30 = vpop.permute.xlu0 %244  ;;  %v387_v31 = vsel %vm195_vm5, %v250_v29, 0.0 }
  0x97   :  { %v386_v32 = vsel %vm194_vm6, %v245_v30, 0.0 }
  0x98   :  { %1153 = vmatprep.mubr.msk.f32.mxu0 %vm422_vm0, %v386_v32 }
  0x99   :  { %1154 = vmatmul.mubr.msk.f32.gmra.mrb[4].mxu0 %vm422_vm0, %v387_v31  ;;  %v117_v33 = vpop.permute.xlu1 %116 }
  0x9a   :  { %v114_v34 = vpop.permute.xlu0 %113  ;;  %vm197_vm7 = vcmp.eq.s32.totalorder %v1546_v14, %v117_v33 }
  0x9b   :  { %vm196_vm8 = vcmp.eq.s32.totalorder %v1546_v14, %v114_v34 }
  0x9d   :  { %v260_v35 = vpop.permute.xlu1 %259 }
  0x9e   :  { %v255_v36 = vpop.permute.xlu0 %254  ;;  %v389_v37 = vsel %vm197_vm7, %v260_v35, 0.0 }
  0x9f   :  { %v388_v38 = vsel %vm196_vm8, %v255_v36, 0.0 }
  0xa0   :  { %1156 = vmatprep.mubr.msk.f32.mxu0 %vm422_vm0, %v388_v38 }
  0xa1   :  { %1157 = vmatmul.mubr.msk.f32.gmra.mrb[6].mxu0 %vm422_vm0, %v389_v37  ;;  %v123_v39 = vpop.permute.xlu1 %122 }
  0xa2   :  { %v120_v40 = vpop.permute.xlu0 %119  ;;  %vm199_vm9 = vcmp.eq.s32.totalorder %v1546_v14, %v123_v39 }
  0xa3   :  { %vm198_vm10 = vcmp.eq.s32.totalorder %v1546_v14, %v120_v40 }
  0xa5   :  { %v270_v41 = vpop.permute.xlu1 %269 }
  0xa6   :  { %v265_v42 = vpop.permute.xlu0 %264  ;;  %v391_v43 = vsel %vm199_vm9, %v270_v41, 0.0 }
  0xa7   :  { %v390_v44 = vsel %vm198_vm10, %v265_v42, 0.0 }
  0xa8   :  { %1159 = vmatprep.mubr.msk.f32.mxu0 %vm422_vm0, %v390_v44 }
  0xa9   :  { %1160 = vmatmul.mubr.msk.f32.gmra.mrb[8].mxu0 %vm422_vm0, %v391_v43  ;;  %v129_v45 = vpop.permute.xlu1 %128 }
  0xaa   :  { %v126_v46 = vpop.permute.xlu0 %125  ;;  %vm201_vm11 = vcmp.eq.s32.totalorder %v1546_v14, %v129_v45 }
  0xab   :  { %vm200_vm12 = vcmp.eq.s32.totalorder %v1546_v14, %v126_v46 }
  0xad   :  { %v280_v47 = vpop.permute.xlu1 %279 }
  0xae   :  { %v275_v48 = vpop.permute.xlu0 %274  ;;  %v393_v49 = vsel %vm201_vm11, %v280_v47, 0.0 }
  0xaf   :  { %v392_v50 = vsel %vm200_vm12, %v275_v48, 0.0 }
  0xb0   :  { %1162 = vmatprep.mubr.msk.f32.mxu0 %vm422_vm0, %v392_v50 }
  0xb1   :  { %1163 = vmatmul.mubr.msk.f32.gmra.mrb[10].mxu0 %vm422_vm0, %v393_v49  ;;  %v135_v51 = vpop.permute.xlu1 %134  ;;  %v745_v49 = vshrl.u32 %v92_v11, 7 }
  0xb2   :  { %v132_v52 = vpop.permute.xlu0 %131  ;;  %vm203_vm13 = vcmp.eq.s32.totalorder %v1546_v14, %v135_v51  ;;  %v746_v51 = vadd.s32 128, %v1546_v14 }
  0xb3   :  { %vm202_vm14 = vcmp.eq.s32.totalorder %v1546_v14, %v132_v52  ;;  %v750_v50 = vadd.s32 1, %v745_v49  ;;  %v747_v52 = vmul.u32 32, %v745_v49  ;;  %v916_v49 = vld [vmem:[%s1674_s5] sm:$0xff] }
  0xb5   :  { %v290_v53 = vpop.permute.xlu1 %289 }
  0xb6   :  { %v285_v54 = vpop.permute.xlu0 %284  ;;  %v395_v55 = vsel %vm203_vm13, %v290_v53, 0.0  ;;  %v751_v53 = vmul.u32 32, %v750_v50  ;;  %v917_v50 = vld [vmem:[%s1674_s5 + $0x8] sm:$0xff] }
  0xb7   :  { %v394_v56 = vsel %vm202_vm14, %v285_v54, 0.0 }
  0xb8   :  { %1165 = vmatprep.mubr.msk.f32.mxu0 %vm422_vm0, %v394_v56  ;;  %v1285_v56 = vmov 1.0  }
  0xb9   :  { %1166 = vmatmul.mubr.msk.f32.gmra.mrb[12].mxu0 %vm422_vm0, %v395_v55  ;;  %v141_v57 = vpop.permute.xlu1 %140  ;;  %v918_v55 = vld [vmem:[%s1674_s5 + $0x10] sm:$0xff] }
  0xba   :  { %v138_v58 = vpop.permute.xlu0 %137  ;;  %vm205_vm15 = vcmp.eq.s32.totalorder %v1546_v14, %v141_v57 }
  0xbb   :  { %vm204_vm1 = vcmp.eq.s32.totalorder %v1546_v14, %v138_v58 }
  0xbd   :  { %v300_v59 = vpop.permute.xlu1 %299 }
  0xbe   :  { %v295_v60 = vpop.permute.xlu0 %294  ;;  %v397_v61 = vsel %vm205_vm15, %v300_v59, 0.0 }
  0xbf   :  { %v396_v62 = vsel %vm204_vm1, %v295_v60, 0.0 }
  0xc0   :  { %1168 = vmatprep.mubr.msk.f32.mxu0 %vm422_vm0, %v396_v62 }
  0xc1   :  { %1169 = vmatmul.mubr.msk.f32.gmra.mrb[14].mxu0 %vm422_vm0, %v397_v61  ;;  %v147_v63 = vpop.permute.xlu1 %146 }
  0xc2   :  { %v144_v0 = vpop.permute.xlu0 %143  ;;  %vm207_vm2 = vcmp.eq.s32.totalorder %v1546_v14, %v147_v63 }
  0xc3   :  { %vm206_vm3 = vcmp.eq.s32.totalorder %v1546_v14, %v144_v0 }
  0xc5   :  { %v310_v1 = vpop.permute.xlu1 %309 }
  0xc6   :  { %v305_v2 = vpop.permute.xlu0 %304  ;;  %v399_v3 = vsel %vm207_vm2, %v310_v1, 0.0 }
  0xc7   :  { %v398_v4 = vsel %vm206_vm3, %v305_v2, 0.0  ;;  %vm749_vm3 = vcmp.ge.s32.totalorder %v746_v51, %v747_v52 }
  0xc8   :  { %1171 = vmatprep.mubr.msk.f32.mxu0 %vm422_vm0, %v398_v4 }
  0xc9   :  { %1172 = vmatmul.mubr.msk.f32.gmra.mrb[16].mxu0 %vm422_vm0, %v399_v3  ;;  %v153_v5 = vpop.permute.xlu1 %152 }
  0xca   :  { %v150_v6 = vpop.permute.xlu0 %149  ;;  %vm209_vm4 = vcmp.eq.s32.totalorder %v1546_v14, %v153_v5 }
  0xcb   :  { %vm208_vm5 = vcmp.eq.s32.totalorder %v1546_v14, %v150_v6 }
  0xcd   :  { %v320_v7 = vpop.permute.xlu1 %319 }
  0xce   :  { %v315_v8 = vpop.permute.xlu0 %314  ;;  %v401_v9 = vsel %vm209_vm4, %v320_v7, 0.0  ;;  %vm753_vm4 = vcmp.lt.s32.totalorder %v746_v51, %v751_v53 }
  0xcf   :  { %v400_v10 = vsel %vm208_vm5, %v315_v8, 0.0  ;;  %vm1615_vm5 = vcmp.ge.s32.totalorder %v1546_v14, %v747_v52 }
  0xd0   :  { %1174 = vmatprep.mubr.msk.f32.mxu0 %vm422_vm0, %v400_v10 }
  0xd1   :  { %1175 = vmatmul.mubr.msk.f32.gmra.mrb[18].mxu0 %vm422_vm0, %v401_v9  ;;  %v159_v12 = vpop.permute.xlu1 %158 }
  0xd2   :  { %v156_v13 = vpop.permute.xlu0 %155  ;;  %vm211_vm6 = vcmp.eq.s32.totalorder %v1546_v14, %v159_v12 }
  0xd3   :  { %vm210_vm7 = vcmp.eq.s32.totalorder %v1546_v14, %v156_v13 }
  0xd5   :  { %v330_v15 = vpop.permute.xlu1 %329 }
  0xd6   :  { %v325_v16 = vpop.permute.xlu0 %324  ;;  %v403_v17 = vsel %vm211_vm6, %v330_v15, 0.0  ;;  %vm755_vm6 = vmand %vm749_vm3, %vm753_vm4 }
  0xd7   :  { %v402_v18 = vsel %vm210_vm7, %v325_v16, 0.0  ;;  %vm1620_vm7 = vcmp.lt.s32.totalorder %v1546_v14, %v751_v53  ;;  %1040 = vmatprep.mubr.msk.f32.mxu1 %vm755_vm6, %v1285_v56  ;;  %v1272_v53 = vpack.c.bf16 %v917_v50, %v916_v49 }
  0xd8   :  { %1177 = vmatprep.mubr.msk.f32.mxu0 %vm422_vm0, %v402_v18 }
  0xd9   :  { %1178 = vmatmul.mubr.msk.f32.gmra.mrb[20].mxu0 %vm422_vm0, %v403_v17  ;;  %v165_v19 = vpop.permute.xlu1 %164 }
  0xda   :  { %v162_v20 = vpop.permute.xlu0 %161  ;;  %vm213_vm8 = vcmp.eq.s32.totalorder %v1546_v14, %v165_v19 }
  0xdb   :  { %vm212_vm9 = vcmp.eq.s32.totalorder %v1546_v14, %v162_v20 }
  0xdd   :  { %v340_v21 = vpop.permute.xlu1 %339 }
  0xde   :  { %v335_v22 = vpop.permute.xlu0 %334  ;;  %v405_v23 = vsel %vm213_vm8, %v340_v21, 0.0  ;;  %vm1287_vm8 = vmmov 0  }
  0xdf   :  { %v404_v24 = vsel %vm212_vm9, %v335_v22, 0.0  ;;  %vm841_vm9 = vcmask 261120  }
  0xe0   :  { %1180 = vmatprep.mubr.msk.f32.mxu0 %vm422_vm0, %v404_v24 }
  0xe1   :  { %1181 = vmatmul.mubr.msk.f32.gmra.mrb[22].mxu0 %vm422_vm0, %v405_v23  ;;  %v171_v25 = vpop.permute.xlu1 %170 }
  0xe2   :  { %v168_v26 = vpop.permute.xlu0 %167  ;;  %vm215_vm10 = vcmp.eq.s32.totalorder %v1546_v14, %v171_v25 }
  0xe3   :  { %vm214_vm11 = vcmp.eq.s32.totalorder %v1546_v14, %v168_v26 }
  0xe5   :  { %v350_v27 = vpop.permute.xlu1 %349 }
  0xe6   :  { %v345_v28 = vpop.permute.xlu0 %344  ;;  %v407_v29 = vsel %vm215_vm10, %v350_v27, 0.0  ;;  %vm1000_vm10 = vcmask 7168  }
  0xe7   :  { %v406_v30 = vsel %vm214_vm11, %v345_v28, 0.0 }
  0xe8   :  { %1183 = vmatprep.mubr.msk.f32.mxu0 %vm422_vm0, %v406_v30 }
  0xe9   :  { %1184 = vmatmul.mubr.msk.f32.gmra.mrb[24].mxu0 %vm422_vm0, %v407_v29  ;;  %v177_v31 = vpop.permute.xlu1 %176 }
  0xea   :  { %v174_v32 = vpop.permute.xlu0 %173  ;;  %vm217_vm12 = vcmp.eq.s32.totalorder %v1546_v14, %v177_v31 }
  0xeb   :  { %vm216_vm13 = vcmp.eq.s32.totalorder %v1546_v14, %v174_v32 }
  0xed   :  { %v360_v33 = vpop.permute.xlu1 %359 }
  0xee   :  { %v355_v34 = vpop.permute.xlu0 %354  ;;  %v409_v35 = vsel %vm217_vm12, %v360_v33, 0.0 }
  0xef   :  { %v408_v36 = vsel %vm216_vm13, %v355_v34, 0.0 }
  0xf0   :  { %1186 = vmatprep.mubr.msk.f32.mxu0 %vm422_vm0, %v408_v36 }
  0xf1   :  { %1187 = vmatmul.mubr.msk.f32.gmra.mrb[26].mxu0 %vm422_vm0, %v409_v35  ;;  %v183_v37 = vpop.permute.xlu1 %182 }
  0xf2   :  { %v180_v38 = vpop.permute.xlu0 %179  ;;  %vm219_vm14 = vcmp.eq.s32.totalorder %v1546_v14, %v183_v37 }
  0xf3   :  { %vm218_vm15 = vcmp.eq.s32.totalorder %v1546_v14, %v180_v38 }
  0xf5   :  { %v370_v39 = vpop.permute.xlu1 %369 }
  0xf6   :  { %v365_v40 = vpop.permute.xlu0 %364  ;;  %v411_v41 = vsel %vm219_vm14, %v370_v39, 0.0 }
  0xf7   :  { %v410_v42 = vsel %vm218_vm15, %v365_v40, 0.0 }
  0xf8   :  { %1189 = vmatprep.mubr.msk.f32.mxu0 %vm422_vm0, %v410_v42  ;;  %v831_v42 = vld [vmem:[%s1673_s3 + $0x8] sm:$0xff] }
  0xf9   :  { %1190 = vmatmul.mubr.msk.f32.gmra.mrb[28].mxu0 %vm422_vm0, %v411_v41  ;;  %v189_v43 = vpop.permute.xlu1 %188  ;;  %v830_v41 = vld [vmem:[%s1673_s3] sm:$0xff] }
  0xfa   :  { %v186_v44 = vpop.permute.xlu0 %185  ;;  %vm221_vm1 = vcmp.eq.s32.totalorder %v1546_v14, %v189_v43  ;;  %v1266_v43 = vpack.c.bf16 %v831_v42, %v830_v41 }
  0xfb   :  { %vm220_vm2 = vcmp.eq.s32.totalorder %v1546_v14, %v186_v44  ;;  %v1286_v44 = vmov 0.0|0.0  }
  0xfd   :  { %v380_v45 = vpop.permute.xlu1 %379 }
  0xfe   :  { %v375_v46 = vpop.permute.xlu0 %374  ;;  %v413_v47 = vsel %vm221_vm1, %v380_v45, 0.0  ;;  %v832_v45 = vld [vmem:[%s1673_s3 + $0x10] sm:$0xff] }
  0xff   :  { %v412_v48 = vsel %vm220_vm2, %v375_v46, 0.0  ;;  %v833_v46 = vld [vmem:[%s1673_s3 + $0x18] sm:$0xff] }
 0x100   :  { %1192 = vmatprep.mubr.msk.f32.mxu0 %vm422_vm0, %v412_v48  ;;  %v1288_v48 = vmov 0.0  }
 0x101   :  { %1193 = vmatmul.mubr.msk.f32.gmra.mrb[30].mxu0 %vm422_vm0, %v413_v47  ;;  %vm754_vm0 = vmand %vm1615_vm5, %vm1620_vm7  ;;  %v1269_v47 = vpack.c.bf16 %v833_v46, %v832_v45 }
 0x15c   :  { %v1149_v11 = vpop.f32.mrb[0].mxu0 }
 0x15d   :  { %v585_v57 = vpop.f32.mrb[1].mxu0 }
 0x15e   :  { %v1235_v58 = vpack.c.bf16 %v1149_v11, %v585_v57  ;;  %v12_v57 = vstv %s1675_s6 }
 0x15f   :  { %13 = vst [vmem:[#allocation2] sm:$0x1] %v12_v57 }
 0x164   :  { %v1152_v59 = vpop.f32.mrb[2].mxu0 }
 0x165   :  { %v595_v60 = vpop.f32.mrb[3].mxu0 }
 0x166   :  { %v1239_v61 = vpack.c.bf16 %v1152_v59, %v595_v60 }
 0x16c   :  { %v1155_v62 = vpop.f32.mrb[4].mxu0 }
 0x16d   :  { %v605_v63 = vpop.f32.mrb[5].mxu0 }
 0x16e   :  { %v1243_v14 = vpack.c.bf16 %v1155_v62, %v605_v63  ;;  %v1044_v63 = vld [vmem:[#allocation2] ss:$0 sm:$0xff] }
 0x174   :  { %v1158_v0 = vpop.f32.mrb[6].mxu0 }
 0x175   :  { %v615_v1 = vpop.f32.mrb[7].mxu0 }
 0x176   :  { %v1247_v2 = vpack.c.bf16 %v1158_v0, %v615_v1 }
 0x17c   :  { %v1161_v3 = vpop.f32.mrb[8].mxu0 }
 0x17d   :  { %v625_v4 = vpop.f32.mrb[9].mxu0 }
 0x17e   :  { %v1251_v5 = vpack.c.bf16 %v1161_v3, %v625_v4 }
 0x184   :  { %v1164_v6 = vpop.f32.mrb[10].mxu0 }
 0x185   :  { %v635_v7 = vpop.f32.mrb[11].mxu0 }
 0x186   :  { %v1255_v8 = vpack.c.bf16 %v1164_v6, %v635_v7 }
 0x18c   :  { %v1167_v9 = vpop.f32.mrb[12].mxu0 }
 0x18d   :  { %v645_v10 = vpop.f32.mrb[13].mxu0 }
 0x18e   :  { %v1259_v12 = vpack.c.bf16 %v1167_v9, %v645_v10 }
 0x194   :  { %v1170_v13 = vpop.f32.mrb[14].mxu0 }
 0x195   :  { %v655_v15 = vpop.f32.mrb[15].mxu0 }
 0x196   :  { %v1263_v16 = vpack.c.bf16 %v1170_v13, %v655_v15 }
 0x19c   :  { %v1173_v17 = vpop.f32.mrb[16].mxu0 }
 0x19d   :  { %v665_v18 = vpop.f32.mrb[17].mxu0 }
 0x19e   :  { %v1233_v19 = vpack.c.bf16 %v1173_v17, %v665_v18 }
 0x1a0   :  { %1234 = vmatprep.subr.bf16.mxu1 %v1233_v19 }
 0x1a1   :  { %1236 = vmatpush3.bf16.msra.mxu1 %v1235_v58  ;;  %v1042_v58 = vld [vmem:[%s1676_s4] ss:$0 sm:$0xff] }
 0x1a4   :  { %v1176_v20 = vpop.f32.mrb[18].mxu0 }
 0x1a5   :  { %v675_v21 = vpop.f32.mrb[19].mxu0 }
 0x1a6   :  { %v1237_v22 = vpack.c.bf16 %v1176_v20, %v675_v21 }
 0x1a8   :  { %1238 = vmatprep.subr.bf16.mxu1 %v1237_v22 }
 0x1a9   :  { %1240 = vmatpush3.bf16.msra.mxu1 %v1239_v61 }
 0x1ac   :  { %v1179_v23 = vpop.f32.mrb[20].mxu0 }
 0x1ad   :  { %v685_v24 = vpop.f32.mrb[21].mxu0 }
 0x1ae   :  { %v1241_v25 = vpack.c.bf16 %v1179_v23, %v685_v24 }
 0x1b0   :  { %1242 = vmatprep.subr.bf16.mxu1 %v1241_v25 }
 0x1b1   :  { %1244 = vmatpush3.bf16.msra.mxu1 %v1243_v14 }
 0x1b4   :  { %v1182_v26 = vpop.f32.mrb[22].mxu0 }
 0x1b5   :  { %v695_v27 = vpop.f32.mrb[23].mxu0 }
 0x1b6   :  { %v1245_v28 = vpack.c.bf16 %v1182_v26, %v695_v27 }
 0x1b8   :  { %1246 = vmatprep.subr.bf16.mxu1 %v1245_v28 }
 0x1b9   :  { %1248 = vmatpush3.bf16.msra.mxu1 %v1247_v2 }
 0x1bc   :  { %v1185_v29 = vpop.f32.mrb[24].mxu0 }
 0x1bd   :  { %v705_v30 = vpop.f32.mrb[25].mxu0 }
 0x1be   :  { %v1249_v31 = vpack.c.bf16 %v1185_v29, %v705_v30 }
 0x1c0   :  { %1250 = vmatprep.subr.bf16.mxu1 %v1249_v31 }
 0x1c1   :  { %1252 = vmatpush3.bf16.msra.mxu1 %v1251_v5 }
 0x1c4   :  { %v1188_v32 = vpop.f32.mrb[26].mxu0 }
 0x1c5   :  { %v715_v33 = vpop.f32.mrb[27].mxu0 }
 0x1c6   :  { %v1253_v34 = vpack.c.bf16 %v1188_v32, %v715_v33 }
 0x1c8   :  { %1254 = vmatprep.subr.bf16.mxu1 %v1253_v34 }
 0x1c9   :  { %1256 = vmatpush3.bf16.msra.mxu1 %v1255_v8 }
 0x1cc   :  { %v1191_v35 = vpop.f32.mrb[28].mxu0 }
 0x1cd   :  { %v725_v36 = vpop.f32.mrb[29].mxu0 }
 0x1ce   :  { %v1257_v37 = vpack.c.bf16 %v1191_v35, %v725_v36 }
 0x1d0   :  { %1258 = vmatprep.subr.bf16.mxu1 %v1257_v37 }
 0x1d1   :  { %1260 = vmatpush3.bf16.msra.mxu1 %v1259_v12 }
 0x1d4   :  { %v1194_v38 = vpop.f32.mrb[30].mxu0 }
 0x1d5   :  { %v735_v39 = vpop.f32.mrb[31].mxu0 }
 0x1d6   :  { %v1261_v40 = vpack.c.bf16 %v1194_v38, %v735_v39 }
 0x1d8   :  { %1262 = vmatprep.subr.bf16.mxu1 %v1261_v40 }
 0x1d9   :  { %1264 = vmatpush3.bf16.msra.mxu1 %v1263_v16 }
 0x1da   :  { %1265 = vmatprep.subr.bf16.mxu1 %v1286_v44 }
 0x1dc   :  { %1041 = vmatmul.mubr.msk.f32.vlgmr.msra.gmra.mrb[0].mxu1 %vm754_vm0, %v1285_v56  ;;  %v919_v56 = vld [vmem:[%s1674_s5 + $0x18] sm:$0xff] }
 0x1dd   :  { %1267 = vmatpush3.bf16.msra.mxu1 %v1266_v43  ;;  %1203 = vmatprep.mubr.msk.f32.mxu1 %vm1287_vm8, %v1288_v48  ;;  %v1275_v11 = vpack.c.bf16 %v919_v56, %v918_v55 }
 0x1de   :  { %1268 = vmatprep.subr.bf16.mxu1 %v1286_v44 }
 0x1e1   :  { %1270 = vmatpush3.bf16.msra.mxu1 %v1269_v47 }
 0x1e2   :  { %1271 = vmatprep.subr.bf16.mxu1 %v1286_v44 }
 0x2af   :  { %v1118_v51 = vpop.f32.mrb[0].mxu1 }
 0x2b0   :  { %v1119_v52 = vpop.f32.mrb[1].mxu1 }
 0x2b1   :  { %v1120_v54 = vadd.f32 %v1119_v52, %v1118_v51 }
 0x2b3   :  { %1204 = vmatmul.mubr.msk.f32.vlgmr.msra.gmra.mrb[2].mxu1 %vm841_vm9, %v1120_v54 }
 0x2b4   :  { %1273 = vmatpush3.bf16.msra.mxu1 %v1272_v53  ;;  %1214 = vmatprep.mubr.msk.f32.mxu1 %vm1287_vm8, %v1288_v48 }
 0x2b5   :  { %1274 = vmatprep.subr.bf16.mxu1 %v1286_v44 }
 0x2b8   :  { %1276 = vmatpush3.bf16.msra.mxu1 %v1275_v11 }
 0x386   :  { %v911_v59 = vpop.f32.mrb[2].mxu1 }
 0x387   :  { %v912_v60 = vadd.f32 %v1042_v58, %v911_v59  ;;  %v1205_v61 = vpop.f32.mrb[3].mxu1 }
 0x389   :  { %v915_v62 = vmax.f32 %v912_v60, 0.0 }
 0x38b   :  { %1215 = vmatmul.mubr.msk.f32.vlgmr.msra.gmra.mrb[4].mxu1 %vm841_vm9, %v915_v62 }
 0x45e   :  { %v996_v14 = vpop.f32.mrb[4].mxu1 }
 0x45f   :  { %v997_v0 = vadd.f32 %v1044_v63, %v996_v14  ;;  %v1216_v1 = vpop.f32.mrb[5].mxu1 }
 0x461   :  { %1001 = vst.msk [vmem:[%s1677_s7] sm:$0xff] %vm1000_vm10, %v997_v0 }

</bundles_post_ra>
